<compile_context>
chip_gen: v5e
topology: v5e:2x2
jax: 0.10.0
libtpu: 0.0.40
codegen_flags: <defaults>
</compile_context>

<pallas_src>
import functools

import jax
import jax.numpy as jnp
from jax.experimental import pallas as pl
from jax.experimental.pallas import tpu as pltpu


# ----------------------------- Pallas kernel -----------------------------
def _sage_mean_kernel(a_ref, x_ref, w_ref, b_ref, o_ref, acc_ref):
    """grid = (i: dest-node row tiles [parallel], k: source-node tiles [arbitrary]).

    a_ref : (tm, tk)        bf16  row-normalized adjacency tile
    x_ref : (tk, Din_pad)   bf16  source-node features
    w_ref : (Din_pad, Dout) bf16  weight (resident across grid)
    b_ref : (1, Dout)       f32   bias row (zeros when bias=False)
    o_ref : (tm, Dout)      f32   output tile (written at last k)
    acc   : (tm, Dout)      f32   VMEM accumulator
    """
    k = pl.program_id(1)

    @pl.when(k == 0)
    def _():
        acc_ref[...] = jnp.zeros_like(acc_ref)

    # Per-node transform for this source tile: relu(x_k @ W + b), f32 math.
    # (Recomputed per row tile i; negligible vs. the NxN aggregation and keeps
    #  the row axis safely megacore-parallel.)
    h = jnp.dot(x_ref[...], w_ref[...], preferred_element_type=jnp.float32)
    h = jnp.maximum(h + b_ref[...], 0.0)

    # Mean aggregation: A_mean rows weight the transformed source nodes.
    acc_ref[...] += jnp.dot(a_ref[...], h.astype(jnp.bfloat16),
                            preferred_element_type=jnp.float32)

    @pl.when(k == pl.num_programs(1) - 1)
    def _():
        o_ref[...] = acc_ref[...]


def _round_up(x, m):
    return (x + m - 1) // m * m


def _pick_tile(n_pad, cap=512):
    """Largest multiple of 128 <= cap that divides n_pad (n_pad % 128 == 0)."""
    t = min(cap, n_pad)
    while n_pad % t != 0 or t % 128 != 0:
        t -= 128
    return t


@functools.partial(jax.jit, static_argnames=("tm", "tk"))
def _sage_conv_padded(a_pad, x_pad, w_pad, b_pad, *, tm, tk):
    n_pad = a_pad.shape[0]
    din_pad = x_pad.shape[1]
    dout_pad = w_pad.shape[1]
    grid = (n_pad // tm, n_pad // tk)
    return pl.pallas_call(
        _sage_mean_kernel,
        out_shape=jax.ShapeDtypeStruct((n_pad, dout_pad), jnp.float32),
        grid_spec=pltpu.PrefetchScalarGridSpec(
            num_scalar_prefetch=0,
            grid=grid,
            in_specs=[
                pl.BlockSpec((tm, tk), lambda i, k: (i, k)),             # A_mean
                pl.BlockSpec((tk, din_pad), lambda i, k: (k, 0)),        # X
                pl.BlockSpec((din_pad, dout_pad), lambda i, k: (0, 0)),  # W (resident)
                pl.BlockSpec((1, dout_pad), lambda i, k: (0, 0)),        # bias
            ],
            out_specs=pl.BlockSpec((tm, dout_pad), lambda i, k: (i, 0)),
            scratch_shapes=[pltpu.VMEM((tm, dout_pad), jnp.float32)],
        ),
        compiler_params=pltpu.CompilerParams(
            dimension_semantics=("parallel", "arbitrary")),
    )(a_pad, x_pad, w_pad, b_pad)


# ------------------------------ JAX glue ---------------------------------
def build_mean_adj(edge_index, num_nodes, dtype=jnp.float32):
    """Dense row-normalized adjacency matching SAGEConv mean pooling.

    Mirrors forward(): remove_self_loops (zero-weight instead of filtering, to
    keep shapes static), add_self_loops, then scatter_mean == scatter_add of
    messages divided by per-row edge counts (deg >= 1 thanks to self loops).
    """
    row, col = edge_index[0], edge_index[1]
    w = (row != col).astype(dtype)                       # remove_self_loops
    loop = jnp.arange(num_nodes, dtype=row.dtype)
    row = jnp.concatenate([row, loop])
    col = jnp.concatenate([col, loop])
    w = jnp.concatenate([w, jnp.ones((num_nodes,), dtype)])  # add_self_loops
    deg = jnp.zeros((num_nodes,), dtype).at[row].add(w)      # scatter_mean count
    a = jnp.zeros((num_nodes, num_nodes), dtype).at[row, col].add(w)
    return a / deg[:, None]


def sage_conv(x, a_mean, weight, bias=None):
    """SAGEConv forward (mean pool, relu act, normalize=False)."""
    n, din = x.shape
    dout = weight.shape[1]
    n_pad = _round_up(n, 128)
    din_pad = _round_up(din, 128)
    dout_pad = _round_up(dout, 128)

    # Zero-pad to lane-dense 128-multiples; operands in bf16, accum in f32.
    a_pad = jnp.zeros((n_pad, n_pad), jnp.bfloat16).at[:n, :n].set(
        a_mean.astype(jnp.bfloat16))
    x_pad = jnp.zeros((n_pad, din_pad), jnp.bfloat16).at[:n, :din].set(
        x.astype(jnp.bfloat16))
    w_pad = jnp.zeros((din_pad, dout_pad), jnp.bfloat16).at[:din, :dout].set(
        weight.astype(jnp.bfloat16))
    b_pad = jnp.zeros((1, dout_pad), jnp.float32)
    if bias is not None:
        b_pad = b_pad.at[0, :dout].set(bias.astype(jnp.float32))

    tm = _pick_tile(n_pad)
    tk = _pick_tile(n_pad)
    out_pad = _sage_conv_padded(a_pad, x_pad, w_pad, b_pad, tm=tm, tk=tk)
    return out_pad[:n, :dout]


def init_sage_params(key, in_channels, out_channels, bias=False):
    """Matches reset_parameters(): uniform(-1/sqrt(in_ch), 1/sqrt(in_ch))."""
    stdv = 1.0 / (in_channels ** 0.5)
    kw, kb = jax.random.split(key)
    weight = jax.random.uniform(kw, (in_channels, out_channels), jnp.float32,
                                -stdv, stdv)
    b = (jax.random.uniform(kb, (out_channels,), jnp.float32, -stdv, stdv)
         if bias else None)
    return weight, b


# ------------------------------- demo ------------------------------------
if __name__ == "__main__":
    key = jax.random.PRNGKey(0)
    k_x, k_e, k_p = jax.random.split(key, 3)

    num_nodes = 64
    in_channels = 32
    out_channels = 32
    num_edges = 192

    x = jax.random.normal(k_x, (num_nodes, in_channels), jnp.float32)
    edge_index = jax.random.randint(k_e, (2, num_edges), 0, num_nodes,
                                    dtype=jnp.int32)
    weight, bias = init_sage_params(k_p, in_channels, out_channels, bias=False)

    # Built once; reuse across time steps when edge_index is fixed (VGRNN).
    a_mean = build_mean_adj(edge_index, num_nodes)

    out = sage_conv(x, a_mean, weight, bias)
    jax.block_until_ready(out)

    # Pure-JAX reference: scatter_mean(relu(x @ W)[col], row) == A_mean @ relu(xW)
    ref = a_mean @ jax.nn.relu(x @ weight)

    assert out.shape == (num_nodes, out_channels)
    assert out.dtype == jnp.float32
    assert bool(jnp.all(jnp.isfinite(out)))
    assert bool(jnp.allclose(out, ref, atol=5e-2, rtol=5e-2))
    print("KERNEL_OK")
</pallas_src>

<mosaic_0001>
module attributes {stable_mosaic.version = 11 : i64} {
  func.func @_sage_mean_kernel(%arg0: i32, %arg1: i32, %arg2: memref<128x128xbf16, #tpu.memory_space<vmem>>, %arg3: memref<128x128xbf16, #tpu.memory_space<vmem>>, %arg4: memref<128x128xbf16, #tpu.memory_space<vmem>>, %arg5: memref<1x128xf32, #tpu.memory_space<vmem>>, %arg6: memref<128x128xf32, #tpu.memory_space<vmem>>, %arg7: memref<128x128xf32, #tpu.memory_space<vmem>>) attributes {dimension_semantics = [#tpu.dimension_semantics<parallel>, #tpu.dimension_semantics<arbitrary>], iteration_bounds = array<i64: 1, 1>, scalar_prefetch = 0 : i64, scratch_operands = 1 : i64, tpu.core_type = #tpu.core_type<tc>, window_params = [{transform_indices = @transform_0, window_bounds = array<i64: 128, 128>}, {transform_indices = @transform_1, window_bounds = array<i64: 128, 128>}, {pipeline_mode = #tpu.pipeline_mode<synchronous>, transform_indices = @transform_2, window_bounds = array<i64: 128, 128>}, {pipeline_mode = #tpu.pipeline_mode<synchronous>, transform_indices = @transform_3, window_bounds = array<i64: 1, 128>}, {transform_indices = @transform_4, window_bounds = array<i64: 128, 128>}]} {
    %c0_i32 = arith.constant 0 : i32
    %0 = arith.cmpi eq, %arg1, %c0_i32 : i32
    %1 = arith.extui %0 : i1 to i32
    %c0_i32_0 = arith.constant 0 : i32
    %2 = arith.cmpi ne, %1, %c0_i32_0 : i32
    scf.if %2 {
      %cst_16 = arith.constant 0.000000e+00 : f32
      %20 = vector.broadcast %cst_16 : f32 to vector<128x128xf32>
      %c0_17 = arith.constant 0 : index
      %c0_18 = arith.constant 0 : index
      %21 = vector.load %arg7[%c0_17, %c0_18] : memref<128x128xf32, #tpu.memory_space<vmem>>, vector<128x128xf32>
      tpu.vector_store %arg7[%c0_17, %c0_18], %20 {strides = array<i32>} : memref<128x128xf32, #tpu.memory_space<vmem>>, vector<128x128xf32>,
    } else {
    }
    %c0 = arith.constant 0 : index
    %c0_1 = arith.constant 0 : index
    %3 = vector.load %arg3[%c0, %c0_1] : memref<128x128xbf16, #tpu.memory_space<vmem>>, vector<128x128xbf16>
    %c0_2 = arith.constant 0 : index
    %c0_3 = arith.constant 0 : index
    %4 = vector.load %arg4[%c0_2, %c0_3] : memref<128x128xbf16, #tpu.memory_space<vmem>>, vector<128x128xbf16>
    %cst = arith.constant dense<0.000000e+00> : vector<128x128xf32>
    %5 = tpu.matmul %3, %4, %cst {dimension_numbers = #tpu.dot_dimension_numbers<[1], [0], [0], [1], [0, 0, 1, 1], [], []>} : vector<128x128xbf16>, vector<128x128xbf16>, vector<128x128xf32> -> vector<128x128xf32>
    %c0_4 = arith.constant 0 : index
    %c0_5 = arith.constant 0 : index
    %6 = vector.load %arg5[%c0_4, %c0_5] : memref<1x128xf32, #tpu.memory_space<vmem>>, vector<1x128xf32>
    %7 = vector.broadcast %6 : vector<1x128xf32> to vector<128x128xf32>
    %8 = arith.addf %5, %7 : vector<128x128xf32>
    %cst_6 = arith.constant 0.000000e+00 : f32
    %9 = vector.broadcast %cst_6 : f32 to vector<128x128xf32>
    %10 = arith.maximumf %8, %9 : vector<128x128xf32>
    %c0_7 = arith.constant 0 : index
    %c0_8 = arith.constant 0 : index
    %11 = vector.load %arg7[%c0_7, %c0_8] : memref<128x128xf32, #tpu.memory_space<vmem>>, vector<128x128xf32>
    %c0_9 = arith.constant 0 : index
    %c0_10 = arith.constant 0 : index
    %12 = vector.load %arg2[%c0_9, %c0_10] : memref<128x128xbf16, #tpu.memory_space<vmem>>, vector<128x128xbf16>
    %13 = arith.truncf %10 : vector<128x128xf32> to vector<128x128xbf16>
    %cst_11 = arith.constant dense<0.000000e+00> : vector<128x128xf32>
    %14 = tpu.matmul %12, %13, %cst_11 {dimension_numbers = #tpu.dot_dimension_numbers<[1], [0], [0], [1], [0, 0, 1, 1], [], []>} : vector<128x128xbf16>, vector<128x128xbf16>, vector<128x128xf32> -> vector<128x128xf32>
    %15 = arith.addf %11, %14 : vector<128x128xf32>
    %c0_12 = arith.constant 0 : index
    %c0_13 = arith.constant 0 : index
    %16 = vector.load %arg7[%c0_12, %c0_13] : memref<128x128xf32, #tpu.memory_space<vmem>>, vector<128x128xf32>
    tpu.vector_store %arg7[%c0_12, %c0_13], %15 {strides = array<i32>} : memref<128x128xf32, #tpu.memory_space<vmem>>, vector<128x128xf32>,
    %c0_i32_14 = arith.constant 0 : i32
    %17 = arith.cmpi eq, %arg1, %c0_i32_14 : i32
    %18 = arith.extui %17 : i1 to i32
    %c0_i32_15 = arith.constant 0 : i32
    %19 = arith.cmpi ne, %18, %c0_i32_15 : i32
    scf.if %19 {
      %c0_16 = arith.constant 0 : index
      %c0_17 = arith.constant 0 : index
      %20 = vector.load %arg7[%c0_16, %c0_17] : memref<128x128xf32, #tpu.memory_space<vmem>>, vector<128x128xf32>
      %c0_18 = arith.constant 0 : index
      %c0_19 = arith.constant 0 : index
      %21 = vector.load %arg6[%c0_18, %c0_19] : memref<128x128xf32, #tpu.memory_space<vmem>>, vector<128x128xf32>
      tpu.vector_store %arg6[%c0_18, %c0_19], %20 {strides = array<i32>} : memref<128x128xf32, #tpu.memory_space<vmem>>, vector<128x128xf32>,
    } else {
    }
    return
  }
  func.func @transform_0(%arg0: i32, %arg1: i32) -> (i32, i32) {
    %c0_i32 = arith.constant 0 : i32
    return %arg0, %arg1 : i32, i32
  }
  func.func @transform_1(%arg0: i32, %arg1: i32) -> (i32, i32) {
    %c0_i32 = arith.constant 0 : i32
    %c0_i32_0 = arith.constant 0 : i32
    return %arg1, %c0_i32 : i32, i32
  }
  func.func @transform_2(%arg0: i32, %arg1: i32) -> (i32, i32) {
    %c0_i32 = arith.constant 0 : i32
    %c0_i32_0 = arith.constant 0 : i32
    %c0_i32_1 = arith.constant 0 : i32
    return %c0_i32, %c0_i32_0 : i32, i32
  }
  func.func @transform_3(%arg0: i32, %arg1: i32) -> (i32, i32) {
    %c0_i32 = arith.constant 0 : i32
    %c0_i32_0 = arith.constant 0 : i32
    %c0_i32_1 = arith.constant 0 : i32
    return %c0_i32, %c0_i32_0 : i32, i32
  }
  func.func @transform_4(%arg0: i32, %arg1: i32) -> (i32, i32) {
    %c0_i32 = arith.constant 0 : i32
    %c0_i32_0 = arith.constant 0 : i32
    return %arg0, %c0_i32 : i32, i32
  }
}

</mosaic_0001>

<bundles_post_ra>
// kernel: _sage_conv_padded.1
= control target key start
LH: loop header
LB: loop body
LE: loop exit
PB: predicated region body
PF: predicated region fallthrough
CT: control target
= control target key end

     0   :  { %9 = vsyncpa [#allocation4], 0  ;;  %s801_s0 = inlined_call_operand.hbm [shape: bf16[128,128], index: 0, kind: input, shape index: {}]   ;;  %s802_s1 = inlined_call_operand.hbm [shape: bf16[128,128], index: 1, kind: input, shape index: {}]   ;;  %s803_s2 = inlined_call_operand.hbm [shape: bf16[128,128], index: 2, kind: input, shape index: {}]   ;;  %s804_s3 = inlined_call_operand.vmem [shape: f32[1,128], index: 3, kind: input, shape index: {}]   ;;  %s805_s4 = inlined_call_operand.hbm [shape: f32[128,128], index: 4, kind: output, shape index: {}]  }
   0x1   :  { %10 = vsyncpa [#allocation7], 0 }
   0x2   :  { %11 = vsyncpa [#allocation5], 0  ;;  %s29_s17 = sshll.u32 %s802_s1, 4  ;;  %s753_s18 = smov [#allocation6]   ;;  %s30_s17 = int_to_ptr.hbm [resolvable:$true] %s29_s17 }
   0x3   :  { %s31_s19 = sshll.u32 %s753_s18, 4  ;;  %s16_s22 = sshll.u32 %s801_s0, 4  ;;  %s32_s19 = int_to_ptr.vmem [resolvable:$true] %s31_s19  ;;  %s17_s22 = int_to_ptr.hbm [resolvable:$true] %s16_s22 }
   0x4   :  { %s754_s23 = smov 64   ;;  %s755_s24 = smov 4  }
   0x5   :  { %37 = dma.hbm_to_vmem [thread:$0]  %s30_s17, 1024, %s32_s19, [#allocation7], %s754_s23, %s754_s23, %s755_s24  }
   0x6   :  { %s756_s25 = smov [#allocation3]   ;;  %s42_s29 = sshll.u32 %s803_s2, 4  ;;  %s43_s29 = int_to_ptr.hbm [resolvable:$true] %s42_s29 }
   0x7   :  { %s18_s26 = sshll.u32 %s756_s25, 4  ;;  %s757_s1 = smov [#allocation8]   ;;  %s19_s26 = int_to_ptr.vmem [resolvable:$true] %s18_s26 }
   0x8   :  { %24 = dma.hbm_to_vmem [thread:$0]  %s17_s22, 1024, %s19_s26, [#allocation4], %s754_s23, %s754_s23, %s755_s24  }
   0x9   :  { %s44_s30 = sshll.u32 %s757_s1, 4  ;;  %s45_s30 = int_to_ptr.vmem [resolvable:$true] %s44_s30 }
   0xa   :  { %50 = dma.hbm_to_vmem [thread:$0]  %s43_s29, 1024, %s45_s30, [#allocation7], %s754_s23, %s754_s23, %s755_s24  }
   0xb   :  { %747 = dma.done.wait [#allocation4], 1024  }
   0xc   :  { %748 = vsyncadd [#allocation4], 4294966272 }
   0xd   :  { %749 = dma.done.wait [#allocation7], 2048  }
   0xe   :  { %750 = vsyncadd [#allocation7], 4294965248  ;;  %v617_v0 = vld [vmem:[#allocation8 + $0x38] sm:$0xff]  ;;  %v616_v1 = vld [vmem:[#allocation8 + $0x30] sm:$0xff]  ;;  %s492_s8 = sshll.u32 %s805_s4, 4  ;;  %s759_s9 = smov 128   ;;  %s493_s8 = int_to_ptr.hbm [resolvable:$true] %s492_s8 }
   0xf   :  { %626 = vmatpush.bf16.msra.mxu2 %v617_v0  ;;  %217 = vmatpush.bf16.msra.mxu0 %v617_v0  ;;  %v615_v2 = vld [vmem:[#allocation8 + $0x28] sm:$0xff]  ;;  %v614_v3 = vld [vmem:[#allocation8 + $0x20] sm:$0xff]  ;;  %v613_v4 = vld [vmem:[#allocation8 + $0x18] sm:$0xff]  ;;  %s760_s10 = smov 8  }
  0x10   :  { %v612_v5 = vld [vmem:[#allocation8 + $0x10] sm:$0xff]  ;;  %v611_v6 = vld [vmem:[#allocation8 + $0x8] sm:$0xff]  ;;  %v610_v7 = vld [vmem:[#allocation8] sm:$0xff] }
  0x11   :  { %v606_v8 = vld [vmem:[#allocation6 + $0x20] sm:$0xff]  ;;  %v607_v10 = vld [vmem:[#allocation6 + $0x28] sm:$0xff]  ;;  %v608_v12 = vld [vmem:[#allocation6 + $0x30] sm:$0xff] }
  0x12   :  { %v602_v9 = vld [vmem:[#allocation6] sm:$0xff]  ;;  %v603_v11 = vld [vmem:[#allocation6 + $0x8] sm:$0xff]  ;;  %v604_v13 = vld [vmem:[#allocation6 + $0x10] sm:$0xff] }
  0x13   :  { %627 = vmatpush.bf16.msra.mxu2 %v616_v1  ;;  %218 = vmatpush.bf16.msra.mxu0 %v616_v1  ;;  %v609_v14 = vld [vmem:[#allocation6 + $0x38] sm:$0xff]  ;;  %v650_v29 = vld [vmem:[%s804_s3] ss:$0 sm:$0xff]  ;;  %s758_s3 = smov [#allocation9]  }
  0x14   :  { %v605_v15 = vld [vmem:[#allocation6 + $0x18] sm:$0xff]  ;;  %s490_s5 = sshll.u32 %s758_s3, 4  ;;  %s491_s5 = int_to_ptr.vmem [resolvable:$true] %s490_s5 }
  0x17   :  { %628 = vmatpush.bf16.msra.mxu2 %v615_v2  ;;  %219 = vmatpush.bf16.msra.mxu0 %v615_v2 }
  0x1b   :  { %629 = vmatpush.bf16.msra.mxu2 %v614_v3  ;;  %220 = vmatpush.bf16.msra.mxu0 %v614_v3 }
  0x1f   :  { %630 = vmatpush.bf16.msra.mxu2 %v613_v4  ;;  %221 = vmatpush.bf16.msra.mxu0 %v613_v4 }
  0x23   :  { %631 = vmatpush.bf16.msra.mxu2 %v612_v5  ;;  %222 = vmatpush.bf16.msra.mxu0 %v612_v5 }
  0x27   :  { %632 = vmatpush.bf16.msra.mxu2 %v611_v6  ;;  %223 = vmatpush.bf16.msra.mxu0 %v611_v6 }
  0x2b   :  { %633 = vmatpush.bf16.msra.mxu2 %v610_v7  ;;  %224 = vmatpush.bf16.msra.mxu0 %v610_v7 }
  0x2e   :  { %245 = vmatmul.bf16.vlgmr.msra.gmra.mxu2 %v606_v8  ;;  %225 = vmatmul.bf16.vlgmr.msra.gmra.mxu0 %v602_v9  ;;  %v618_v9 = vld [vmem:[#allocation3] sm:$0xff] }
  0x3e   :  { %250 = vmatmul.bf16.gmra.mxu2 %v607_v10  ;;  %230 = vmatmul.bf16.gmra.mxu0 %v603_v11  ;;  %v622_v10 = vld [vmem:[#allocation3 + $0x20] sm:$0xff]  ;;  %v619_v11 = vld [vmem:[#allocation3 + $0x8] sm:$0xff] }
  0x4e   :  { %255 = vmatmul.bf16.gmra.mxu2 %v608_v12  ;;  %235 = vmatmul.bf16.gmra.mxu0 %v604_v13  ;;  %v623_v12 = vld [vmem:[#allocation3 + $0x28] sm:$0xff]  ;;  %v620_v13 = vld [vmem:[#allocation3 + $0x10] sm:$0xff] }
  0x5e   :  { %260 = vmatmul.bf16.gmra.mxu2 %v609_v14  ;;  %240 = vmatmul.bf16.gmra.mxu0 %v605_v15  ;;  %v624_v14 = vld [vmem:[#allocation3 + $0x30] sm:$0xff]  ;;  %v621_v15 = vld [vmem:[#allocation3 + $0x18] sm:$0xff] }
  0xab   :  { %v226_v16 = vpop.f32.mrf.mxu0 }
  0xac   :  { %v227_v0 = vadd.f32 %v650_v29, %v226_v16  ;;  %v625_v16 = vld [vmem:[#allocation3 + $0x38] sm:$0xff] }
  0xae   :  { %v266_v5 = vmax.f32 %v227_v0, 0.0 }
  0xb1   :  { %v246_v17 = vpop.f32.mrf.mxu2 }
  0xb2   :  { %v247_v46 = vadd.f32 %v650_v29, %v246_v17 }
  0xb3   :  { %v228_v18 = vpop.f32.mrf.mxu0 }
  0xb4   :  { %v274_v53 = vmax.f32 %v247_v46, 0.0  ;;  %v229_v1 = vadd.f32 %v650_v29, %v228_v18 }
  0xb6   :  { %v267_v6 = vmax.f32 %v229_v1, 0.0 }
  0xb8   :  { %v314_v8 = vpack.c.bf16 %v267_v6, %v266_v5 }
  0xb9   :  { %v248_v19 = vpop.f32.mrf.mxu2 }
  0xba   :  { %v249_v43 = vadd.f32 %v650_v29, %v248_v19 }
  0xbb   :  { %v231_v21 = vpop.f32.mrf.mxu0 }
  0xbc   :  { %v275_v49 = vmax.f32 %v249_v43, 0.0  ;;  %v232_v59 = vadd.f32 %v650_v29, %v231_v21 }
  0xbe   :  { %v318_v54 = vpack.c.bf16 %v275_v49, %v274_v53  ;;  %v268_v2 = vmax.f32 %v232_v59, 0.0 }
  0xc1   :  { %v251_v20 = vpop.f32.mrf.mxu2 }
  0xc2   :  { %v252_v41 = vadd.f32 %v650_v29, %v251_v20 }
  0xc3   :  { %v233_v23 = vpop.f32.mrf.mxu0 }
  0xc4   :  { %v276_v48 = vmax.f32 %v252_v41, 0.0  ;;  %v234_v60 = vadd.f32 %v650_v29, %v233_v23 }
  0xc6   :  { %v269_v3 = vmax.f32 %v234_v60, 0.0 }
  0xc8   :  { %v315_v7 = vpack.c.bf16 %v269_v3, %v268_v2 }
  0xc9   :  { %v253_v22 = vpop.f32.mrf.mxu2 }
  0xca   :  { %v254_v38 = vadd.f32 %v650_v29, %v253_v22 }
  0xcb   :  { %v236_v25 = vpop.f32.mrf.mxu0 }
  0xcc   :  { %v277_v44 = vmax.f32 %v254_v38, 0.0  ;;  %v237_v55 = vadd.f32 %v650_v29, %v236_v25 }
  0xce   :  { %v319_v52 = vpack.c.bf16 %v277_v44, %v276_v48  ;;  %v270_v61 = vmax.f32 %v237_v55, 0.0 }
  0xd1   :  { %v256_v24 = vpop.f32.mrf.mxu2 }
  0xd2   :  { %v257_v35 = vadd.f32 %v650_v29, %v256_v24 }
  0xd3   :  { %v238_v27 = vpop.f32.mrf.mxu0 }
  0xd4   :  { %v278_v42 = vmax.f32 %v257_v35, 0.0  ;;  %v239_v56 = vadd.f32 %v650_v29, %v238_v27 }
  0xd6   :  { %v271_v62 = vmax.f32 %v239_v56, 0.0 }
  0xd8   :  { %v316_v4 = vpack.c.bf16 %v271_v62, %v270_v61 }
  0xd9   :  { %v258_v26 = vpop.f32.mrf.mxu2 }
  0xda   :  { %v259_v33 = vadd.f32 %v650_v29, %v258_v26 }
  0xdb   :  { %v241_v31 = vpop.f32.mrf.mxu0 }
  0xdc   :  { %v279_v39 = vmax.f32 %v259_v33, 0.0  ;;  %v242_v50 = vadd.f32 %v650_v29, %v241_v31 }
  0xde   :  { %v320_v45 = vpack.c.bf16 %v279_v39, %v278_v42  ;;  %v272_v57 = vmax.f32 %v242_v50, 0.0 }
  0xe1   :  { %v261_v28 = vpop.f32.mrf.mxu2 }
  0xe2   :  { %v262_v30 = vadd.f32 %v650_v29, %v261_v28 }
  0xe3   :  { %v243_v47 = vpop.f32.mrf.mxu0 }
  0xe4   :  { %v280_v36 = vmax.f32 %v262_v30, 0.0  ;;  %v244_v51 = vadd.f32 %v650_v29, %v243_v47 }
  0xe6   :  { %v273_v58 = vmax.f32 %v244_v51, 0.0 }
  0xe8   :  { %v317_v63 = vpack.c.bf16 %v273_v58, %v272_v57 }
  0xe9   :  { %v263_v32 = vpop.f32.mrf.mxu2 }
  0xea   :  { %v264_v34 = vadd.f32 %v650_v29, %v263_v32 }
  0xec   :  { %v281_v37 = vmax.f32 %v264_v34, 0.0 }
  0xee   :  { %v321_v40 = vpack.c.bf16 %v281_v37, %v280_v36 }
  0xf0   :  { %370 = vmatpush.bf16.msra.mxu1 %v321_v40  ;;  %634 = vmatpush.bf16.msra.mxu3 %v321_v40 }
  0xf4   :  { %371 = vmatpush.bf16.msra.mxu1 %v320_v45  ;;  %635 = vmatpush.bf16.msra.mxu3 %v320_v45 }
  0xf8   :  { %372 = vmatpush.bf16.msra.mxu1 %v319_v52  ;;  %636 = vmatpush.bf16.msra.mxu3 %v319_v52 }
  0xfc   :  { %373 = vmatpush.bf16.msra.mxu1 %v318_v54  ;;  %637 = vmatpush.bf16.msra.mxu3 %v318_v54 }
 0x100   :  { %374 = vmatpush.bf16.msra.mxu1 %v317_v63  ;;  %638 = vmatpush.bf16.msra.mxu3 %v317_v63 }
 0x104   :  { %375 = vmatpush.bf16.msra.mxu1 %v316_v4  ;;  %639 = vmatpush.bf16.msra.mxu3 %v316_v4 }
 0x108   :  { %376 = vmatpush.bf16.msra.mxu1 %v315_v7  ;;  %640 = vmatpush.bf16.msra.mxu3 %v315_v7 }
 0x10c   :  { %377 = vmatpush.bf16.msra.mxu1 %v314_v8  ;;  %641 = vmatpush.bf16.msra.mxu3 %v314_v8 }
 0x10f   :  { %378 = vmatmul.bf16.vlgmr.msra.gmra.mxu1 %v618_v9  ;;  %398 = vmatmul.bf16.vlgmr.msra.gmra.mxu3 %v622_v10 }
 0x11f   :  { %383 = vmatmul.bf16.gmra.mxu1 %v619_v11  ;;  %403 = vmatmul.bf16.gmra.mxu3 %v623_v12 }
 0x12f   :  { %388 = vmatmul.bf16.gmra.mxu1 %v620_v13  ;;  %408 = vmatmul.bf16.gmra.mxu3 %v624_v14 }
 0x13f   :  { %393 = vmatmul.bf16.gmra.mxu1 %v621_v15  ;;  %413 = vmatmul.bf16.gmra.mxu3 %v625_v16 }
 0x18c   :  { %v379_v17 = vpop.f32.mrf.mxu1 }
 0x18d   :  { %470 = vst [vmem:[#allocation9] sm:$0xff] %v379_v17 }
 0x192   :  { %v399_v18 = vpop.f32.mrf.mxu3 }
 0x193   :  { %478 = vst [vmem:[#allocation9 + $0x40] sm:$0xff] %v399_v18 }
 0x194   :  { %v381_v19 = vpop.f32.mrf.mxu1 }
 0x195   :  { %471 = vst [vmem:[#allocation9 + $0x8] sm:$0xff] %v381_v19 }
 0x19a   :  { %v401_v20 = vpop.f32.mrf.mxu3 }
 0x19b   :  { %479 = vst [vmem:[#allocation9 + $0x48] sm:$0xff] %v401_v20 }
 0x19c   :  { %v384_v21 = vpop.f32.mrf.mxu1 }
 0x19d   :  { %472 = vst [vmem:[#allocation9 + $0x10] sm:$0xff] %v384_v21 }
 0x1a2   :  { %v404_v22 = vpop.f32.mrf.mxu3 }
 0x1a3   :  { %480 = vst [vmem:[#allocation9 + $0x50] sm:$0xff] %v404_v22 }
 0x1a4   :  { %v386_v23 = vpop.f32.mrf.mxu1 }
 0x1a5   :  { %473 = vst [vmem:[#allocation9 + $0x18] sm:$0xff] %v386_v23 }
 0x1aa   :  { %v406_v24 = vpop.f32.mrf.mxu3 }
 0x1ab   :  { %481 = vst [vmem:[#allocation9 + $0x58] sm:$0xff] %v406_v24 }
 0x1ac   :  { %v389_v25 = vpop.f32.mrf.mxu1 }
 0x1ad   :  { %474 = vst [vmem:[#allocation9 + $0x20] sm:$0xff] %v389_v25 }
 0x1b2   :  { %v409_v26 = vpop.f32.mrf.mxu3 }
 0x1b3   :  { %482 = vst [vmem:[#allocation9 + $0x60] sm:$0xff] %v409_v26 }
 0x1b4   :  { %v391_v27 = vpop.f32.mrf.mxu1 }
 0x1b5   :  { %475 = vst [vmem:[#allocation9 + $0x28] sm:$0xff] %v391_v27 }
 0x1ba   :  { %v411_v28 = vpop.f32.mrf.mxu3 }
 0x1bb   :  { %483 = vst [vmem:[#allocation9 + $0x68] sm:$0xff] %v411_v28 }
 0x1bc   :  { %v394_v29 = vpop.f32.mrf.mxu1 }
 0x1bd   :  { %476 = vst [vmem:[#allocation9 + $0x30] sm:$0xff] %v394_v29 }
 0x1c2   :  { %v414_v30 = vpop.f32.mrf.mxu3 }
 0x1c3   :  { %484 = vst [vmem:[#allocation9 + $0x70] sm:$0xff] %v414_v30 }
 0x1c4   :  { %v396_v31 = vpop.f32.mrf.mxu1 }
 0x1c5   :  { %477 = vst [vmem:[#allocation9 + $0x38] sm:$0xff] %v396_v31 }
 0x1ca   :  { %v416_v32 = vpop.f32.mrf.mxu3 }
 0x1cb   :  { %485 = vst [vmem:[#allocation9 + $0x78] sm:$0xff] %v416_v32 }
 0x1cc   :  { %498 = dma.vmem_to_hbm [thread:$0]  %s491_s5, 2048, %s493_s8, [#allocation5], %s759_s9, %s759_s9, %s760_s10  }
 0x1cd   :  { %751 = dma.done.wait [#allocation5], 2048  }
 0x1ce   :  { %752 = vsyncadd [#allocation5], 4294965248 }
 0x1cf   :  { %503 = vsyncpa [#allocation4], 1 }
 0x1d0   :  { %504 = vsyncpa [#allocation7], 1 }
 0x1d1   :  { %505 = vsyncpa [#allocation5], 1 }

</bundles_post_ra>
